<compile_context>
chip_gen: v7x
topology: tpu7x:2x2x1
jax: 0.10.0
libtpu: 0.0.40
codegen_flags: <defaults>
</compile_context>

<pallas_src>
import jax
import jax.numpy as jnp
from jax.experimental import pallas as pl
from jax.experimental.pallas import tpu as pltpu


def _adaptive_weight_loss_kernel(wl_ref, o_ref):
    # wl_ref: (2, N) f32 in VMEM; row 0 = raw weight params, row 1 = losses.
    x = wl_ref[0:1, :]                                # (1, N) raw weight params
    l = wl_ref[1:2, :]                                # (1, N) loss scalars

    # softplus with PyTorch's default beta=1, threshold=20
    sp = jnp.where(x > 20.0, x, jnp.log1p(jnp.exp(jnp.minimum(x, 20.0))))

    # Two independent cross-lane reductions issued back to back (no vector
    # divide / broadcast of the denominator).
    spl = sp * l
    num = jnp.sum(spl)                                # sum_i softplus(w_i) * l_i
    total = jnp.sum(sp)                               # sum_i softplus(w_i)

    # Scalar rescale; identical to normalizing then weighting.
    o_ref[0, 0] = num / (total + 1e-8)


def adaptive_weight_loss(weights, losses):
    """weights: (num_losses,) f32 params; losses: (num_losses,) f32 scalars."""
    w = weights.reshape(-1).astype(jnp.float32)
    l = losses.reshape(-1).astype(jnp.float32)
    wl = jnp.stack([w, l], axis=0)                    # (2, N) -> single DMA
    n = wl.shape[1]

    out = pl.pallas_call(
        _adaptive_weight_loss_kernel,
        out_shape=jax.ShapeDtypeStruct((1, 1), jnp.float32),
        in_specs=[
            pl.BlockSpec((2, n), lambda: (0, 0), memory_space=pltpu.VMEM),
        ],
        out_specs=pl.BlockSpec(memory_space=pltpu.SMEM),
        cost_estimate=pl.CostEstimate(
            flops=10 * n,
            transcendentals=2 * n,
            bytes_accessed=8 * n + 4,
        ),
    )(wl)
    return out[0, 0]


def _reference(weights, losses):
    sp = jnp.logaddexp(weights, 0.0)
    nw = sp / (sp.sum() + 1e-8)
    return jnp.sum(nw * losses)


if __name__ == "__main__":
    num_losses = 4

    # Deterministic parameter init: nn.Parameter(torch.zeros(num_losses))
    weights = jnp.zeros((num_losses,), dtype=jnp.float32)

    # Synthetic scalar losses (stand-ins for the list of loss tensors)
    key = jax.random.PRNGKey(0)
    losses = jax.random.uniform(key, (num_losses,), dtype=jnp.float32) * 3.0

    out = adaptive_weight_loss(weights, losses)
    out = jax.block_until_ready(out)

    ref = _reference(weights, losses)
    assert jnp.allclose(out, ref, rtol=1e-5, atol=1e-6), (out, ref)

    print("KERNEL_OK")
</pallas_src>

<mosaic_0001>
module attributes {stable_mosaic.version = 11 : i64} {
  func.func @_adaptive_weight_loss_kernel(%arg0: memref<2x4xf32, #tpu.memory_space<vmem>>, %arg1: memref<1x1xf32, #tpu.memory_space<smem>>) attributes {dimension_semantics = [], scalar_prefetch = 0 : i64, scratch_operands = 0 : i64, tpu.core_type = #tpu.core_type<tc>} {
    %c0 = arith.constant 0 : index
    %c0_0 = arith.constant 0 : index
    %0 = vector.load %arg0[%c0, %c0_0] : memref<2x4xf32, #tpu.memory_space<vmem>>, vector<1x4xf32>
    %c1 = arith.constant 1 : index
    %c0_1 = arith.constant 0 : index
    %1 = vector.load %arg0[%c1, %c0_1] : memref<2x4xf32, #tpu.memory_space<vmem>>, vector<1x4xf32>
    %cst = arith.constant 2.000000e+01 : f32
    %2 = vector.broadcast %cst : f32 to vector<1x4xf32>
    %3 = arith.cmpf ogt, %0, %2 : vector<1x4xf32>
    %cst_2 = arith.constant 2.000000e+01 : f32
    %4 = vector.broadcast %cst_2 : f32 to vector<1x4xf32>
    %5 = arith.minimumf %0, %4 : vector<1x4xf32>
    %6 = math.exp %5 : vector<1x4xf32>
    %7 = math.log1p %6 : vector<1x4xf32>
    %8 = arith.select %3, %0, %7 : vector<1x4xi1>, vector<1x4xf32>
    %9 = arith.mulf %8, %1 : vector<1x4xf32>
    %10 = vector.shape_cast %9 : vector<1x4xf32> to vector<1x1x4xf32>
    %cst_3 = arith.constant dense<0.000000e+00> : vector<1xf32>
    %11 = vector.multi_reduction <add>, %10, %cst_3 [1, 2] : vector<1x1x4xf32> to vector<1xf32>
    %12 = vector.shape_cast %11 : vector<1xf32> to vector<1x1x1xf32>
    %13 = vector.extract %12[0, 0, 0] : f32 from vector<1x1x1xf32>
    %14 = vector.shape_cast %8 : vector<1x4xf32> to vector<1x1x4xf32>
    %cst_4 = arith.constant dense<0.000000e+00> : vector<1xf32>
    %15 = vector.multi_reduction <add>, %14, %cst_4 [1, 2] : vector<1x1x4xf32> to vector<1xf32>
    %16 = vector.shape_cast %15 : vector<1xf32> to vector<1x1x1xf32>
    %17 = vector.extract %16[0, 0, 0] : f32 from vector<1x1x1xf32>
    %cst_5 = arith.constant 9.99999993E-9 : f32
    %18 = arith.addf %17, %cst_5 : f32
    %19 = arith.divf %13, %18 : f32
    %c0_6 = arith.constant 0 : index
    %c0_7 = arith.constant 0 : index
    %20 = memref.load %arg1[%c0_6, %c0_7] : memref<1x1xf32, #tpu.memory_space<smem>>
    memref.store %19, %arg1[%c0_6, %c0_7] : memref<1x1xf32, #tpu.memory_space<smem>>
    return
  }
}

</mosaic_0001>

<bundles_post_ra>
// kernel: tpu_custom_call.1
= control target key start
LH: loop header
LB: loop body
LE: loop exit
PB: predicated region body
PF: predicated region fallthrough
CT: control target
= control target key end

     0   :  { %6 = vsyncpa [#allocation3], 0  ;;  %s166_s0 = inlined_call_operand.hbm [shape: f32[2,4], index: 0, kind: input, shape index: {}]   ;;  %s167_s1 = inlined_call_operand.hbm [shape: f32[1,1], index: 1, kind: output, shape index: {}]  }
   0x1   :  { %7 = vsyncpa [#allocation4], 0  ;;  %s130_s6 = smov [#allocation2]   ;;  %s94_s10 = scalar_lea.hbm %s166_s0, 32 }
   0x2   :  { %s14_s7 = sshll.u32 %s130_s6, 4  ;;  %p95_p0 = scmp.ne.s32.totalorder %s166_s0, %s94_s10  ;;  %s15_s7 = int_to_ptr.vmem [resolvable:$true] %s14_s7 }
   0x3   :  { %p98_p1 = scmp.lt.u32.totalorder %s94_s10, %s166_s0 }
   0x5   :  { %p100_p2 = pnand %p98_p1, %p95_p0 }
   0x7   :  { %103 = shalt.err (!%p100_p2)
}
   0x8   :  { %s104_s15 = scalar_lea.vmem %s15_s7, 32  ;;  %p109_p4 = scmp.lt.s32.totalorder %s15_s7, %s15_s7 }
   0x9   :  { %p105_p3 = scmp.ne.s32.totalorder %s15_s7, %s104_s15  ;;  %p110_p5 = scmp.lt.s32.totalorder %s104_s15, %s104_s15 }
   0xb   :  { %p111_p6 = por %p110_p5, %p109_p4 }
   0xd   :  { %p112_p7 = pnand %p111_p6, %p105_p3 }
   0xf   :  { %115 = shalt.err (!%p112_p7)
}
  0x10   :  { %17 = dma.hbm_to_vmem [thread:$0]  %s166_s0, 32, %s15_s7, [#allocation3]  }
  0x11   :  { %126 = dma.done.wait [#allocation3], 32  }
  0x12   :  { %127 = vsyncadd [#allocation3], 4294967264  ;;  %v21_v0 = vld [vmem:[#allocation2] sm:$0x1]  ;;  %v22_v11 = vld [vmem:[#allocation2 + $0x1] sm:$0x1] }
  0x13   :  { %v24_v1 = vmin.f32 %v21_v0, 20.0  ;;  %vm23_vm1 = vcmp.gt.f32.partialorder %v21_v0, 20.0  ;;  %vm38_vm2 = vcmask 24576   ;;  %s116_s24 = scalar_lea.hbm %s167_s1, 16 }
  0x14   :  { %p117_p8 = scmp.ne.s32.totalorder %s167_s1, %s116_s24  ;;  %p120_p9 = scmp.lt.u32.totalorder %s116_s24, %s167_s1 }
  0x15   :  { %v25_v2 = vmul.f32 1.442695, %v24_v1 }
  0x16   :  { %p122_p10 = pnand %p120_p9, %p117_p8 }
  0x17   :  { %88 = vpow2.f32 %v25_v2 }
  0x21   :  { %v89_v3 = vpop.eup %88 }
  0x22   :  { %v27_v4 = vadd.f32 1.0, %v89_v3  ;;  %v30_v5 = vmul.f32 -0.5, %v89_v3  ;;  %v33_v7 = vand.u32 2147483647, %v89_v3 }
  0x24   :  { %90 = vlog2.f32 %v27_v4  ;;  %v31_v6 = vadd.f32 1.0, %v30_v5  ;;  %vm34_vm0 = vcmp.lt.f32.partialorder %v33_v7, 0.0004427343 }
  0x26   :  { %v32_v8 = vmul.f32 %v89_v3, %v31_v6 }
  0x2e   :  { %v91_v9 = vpop.eup %90 }
  0x2f   :  { %v29_v10 = vmul.f32 0.6931472, %v91_v9 }
  0x31   :  { %v35_v12 = vsel %vm34_vm0, %v32_v8, %v29_v10 }
  0x32   :  { %v36_v13 = vsel %vm23_vm1, %v21_v0, %v35_v12 }
  0x33   :  { %v37_v14 = vmul.f32 %v36_v13, %v22_v11  ;;  %v49_v16 = vsel %vm38_vm2, %v36_v13, 0.0 }
  0x35   :  { %v39_v15 = vsel %vm38_vm2, %v37_v14, 0.0 }
  0x36   :  { %40 = vadd.xlane.f32.xlu0 %v39_v15 }
  0x3a   :  { %50 = vadd.xlane.f32.xlu0 %v49_v16 }
  0xc3   :  { %v41_v17 = vpop.xlane.xlu0 %40 }
  0xc4   :  { %v42_v18 = vrot.slane %v41_v17, 4 }
  0xc6   :  { %v43_v19 = vadd.f32 %v42_v18, %v41_v17 }
  0xc7   :  { %v51_v20 = vpop.xlane.xlu0 %50 }
  0xc8   :  { %v44_v21 = vrot.slane %v43_v19, 2  ;;  %v52_v22 = vrot.slane %v51_v20, 4 }
  0xca   :  { %v53_v23 = vadd.f32 %v52_v22, %v51_v20  ;;  %v45_v24 = vadd.f32 %v44_v21, %v43_v19 }
  0xcc   :  { %v54_v25 = vrot.slane %v53_v23, 2  ;;  %v46_v26 = vrot.slane %v45_v24, 1 }
  0xce   :  { %v55_v27 = vadd.f32 %v54_v25, %v53_v23  ;;  %v47_v28 = vadd.f32 %v46_v26, %v45_v24 }
  0xd0   :  { %80 = vpush %v47_v28  ;;  %v56_v29 = vrot.slane %v55_v27, 1 }
  0xd2   :  { %v57_v30 = vadd.f32 %v56_v29, %v55_v27 }
  0xd4   :  { %82 = vpush %v57_v30 }
 0x101   :  { %s81_s0 = spop %80 }
 0x105   :  { %s83_s18 = spop %82 }
 0x106   :  { %s59_s19 = sadd.f32 1e-08, %s83_s18 }
 0x108   :  { %v60_v31 = vstv %s59_s19 }
 0x109   :  { %92 = vrcp.f32 %v60_v31 }
 0x113   :  { %v93_v32 = vpop.eup %92 }
 0x114   :  { %84 = vpush %v93_v32 }
 0x145   :  { %s85_s20 = spop %84 }
 0x146   :  { %s63_s21 = smul.f32 %s85_s20, %s81_s0 }
 0x148   :  { %65 = sst [smem:[#allocation5]] %s63_s21 }
 0x149   :  { %125 = shalt.err (!%p122_p10)
}
 0x14a   :  { %s131_s29 = smov [#allocation5]  }
 0x14b   :  { %73 = dma.smem_to_hbm %s131_s29, 16, %s167_s1, [#allocation4]  }
 0x14c   :  { %128 = dma.done.wait [#allocation4], 16  }
 0x14d   :  { %129 = vsyncadd [#allocation4], 4294967280 }
 0x14e   :  { %77 = sfence }
 0x14f   :  { %78 = vsyncpa [#allocation3], 1 }
 0x150   :  { %79 = vsyncpa [#allocation4], 1 }

</bundles_post_ra>
